<compile_context>
chip_gen: v7x
topology: tpu7x:2x2x1
jax: 0.10.0
libtpu: 0.0.40
codegen_flags: <defaults>
</compile_context>

<pallas_src>
import functools

import jax
import jax.numpy as jnp
from jax.experimental import pallas as pl
from jax.experimental.pallas import tpu as pltpu

context_length = 8
emb_dim = 32
vocab_size = 65  # synthetic char vocab (e.g. Shakespeare charset size)

LANE = 128
SUBLANE = 8
MAX_ROW_BLOCK = 2048                  # rows per grid step (sweep 1024/2048/4096)
VMEM_LIMIT_BYTES = 32 * 1024 * 1024   # explicit: v5e default scoped VMEM is 16 MiB
NEG_INF = -1e30


def _round_up(x, m):
    return (x + m - 1) // m * m


# ----------------------------------------------------------------------------
# Fused bigram table: T[tok, :] = E[tok] @ W + b, lane-padded to (128, 128).
# Build once per weight update (hoist out of generate / inference loops).
# ----------------------------------------------------------------------------
def make_fused_table(params):
    V = params["embedding_table"].shape[0]
    vpad = _round_up(V, LANE)
    table = (jnp.dot(params["embedding_table"], params["head_w"],
                     precision=jax.lax.Precision.HIGHEST)
             + params["head_b"])                                   # (V, V)
    table = jnp.pad(table, ((0, vpad - V), (0, 0)))                # pad rows: 0
    table = jnp.pad(table, ((0, 0), (0, vpad - V)),
                    constant_values=NEG_INF)                       # pad lanes: -inf
    return table                                                   # (Vpad, Vpad)


# ----------------------------------------------------------------------------
# In-kernel building blocks
# ----------------------------------------------------------------------------
def _logits_block(ctx_ref, t_ref):
    """logits = one_hot(ctx) @ T  -- single lane-dense MXU dot per block."""
    vpad = t_ref.shape[1]
    ctx = ctx_ref[...]                                             # (TBN, 1) i32
    lane_iota = jax.lax.broadcasted_iota(jnp.int32, (1, vpad), 1)  # (1, Vpad)
    one_hot = (ctx == lane_iota).astype(jnp.float32)               # (TBN, Vpad)
    # one_hot has exactly one 1.0 per row, so this dot is a value-exact row
    # gather of the f32 table (validated against a full-f32 reference @ 1e-4).
    return jnp.dot(one_hot, t_ref[...], preferred_element_type=jnp.float32)


def _ce_block_sum(logits, tgt_ref, *, n_rows, row_block, mask_rows):
    """(1,1) sum of per-row cross-entropy for this block (pad lanes are -inf)."""
    vpad = logits.shape[1]
    lane_iota = jax.lax.broadcasted_iota(jnp.int32, (1, vpad), 1)
    m = jnp.max(logits, axis=-1, keepdims=True)
    lse = jnp.log(jnp.sum(jnp.exp(logits - m), axis=-1, keepdims=True)) + m
    tgt = tgt_ref[...]                                             # (TBN, 1) i32
    correct = jnp.sum(jnp.where(tgt == lane_iota, logits, 0.0),
                      axis=-1, keepdims=True)                      # (TBN, 1)
    per_row = lse - correct
    if mask_rows:
        # Static: only emitted when bn_pad > B*N.  Padded rows (ctx=tgt=0)
        # must be excluded or they bias the global mean.
        i = pl.program_id(0)
        row_iota = jax.lax.broadcasted_iota(jnp.int32, (row_block, 1), 0)
        per_row = per_row * ((i * row_block + row_iota) < n_rows
                             ).astype(jnp.float32)
    return jnp.sum(per_row, keepdims=True)                         # (1, 1)


# ----------------------------------------------------------------------------
# Kernels
# ----------------------------------------------------------------------------
def _logits_kernel(ctx_ref, t_ref, out_ref):
    out_ref[...] = _logits_block(ctx_ref, t_ref).astype(out_ref.dtype)


def _fused_kernel(ctx_ref, tgt_ref, t_ref, logits_ref, partial_ref, *,
                  n_rows, row_block, mask_rows):
    logits = _logits_block(ctx_ref, t_ref)
    logits_ref[...] = logits.astype(logits_ref.dtype)
    s = _ce_block_sum(logits, tgt_ref, n_rows=n_rows, row_block=row_block,
                      mask_rows=mask_rows)
    partial_ref[...] = jnp.broadcast_to(s, (SUBLANE, LANE))


def _loss_kernel(ctx_ref, tgt_ref, t_ref, partial_ref, *,
                 n_rows, row_block, mask_rows):
    logits = _logits_block(ctx_ref, t_ref)
    s = _ce_block_sum(logits, tgt_ref, n_rows=n_rows, row_block=row_block,
                      mask_rows=mask_rows)
    partial_ref[...] = jnp.broadcast_to(s, (SUBLANE, LANE))


# ----------------------------------------------------------------------------
# pallas_call wrappers
# ----------------------------------------------------------------------------
def _compiler_params():
    # Every grid block writes disjoint output tiles -> "parallel" is safe and
    # lets v7x shard across its 2 TensorCores.  Explicit VMEM limit keeps the
    # same block size valid on v5e (16 MiB default scoped VMEM).
    return pltpu.CompilerParams(dimension_semantics=("parallel",),
                                vmem_limit_bytes=VMEM_LIMIT_BYTES)


def _pallas_logits(ctx2d, table, *, row_block, out_dtype):
    bn_pad = ctx2d.shape[0]
    vpad = table.shape[1]
    return pl.pallas_call(
        _logits_kernel,
        out_shape=jax.ShapeDtypeStruct((bn_pad, vpad), out_dtype),
        grid=(bn_pad // row_block,),
        in_specs=[pl.BlockSpec((row_block, 1), lambda i: (i, 0)),
                  pl.BlockSpec((vpad, vpad), lambda i: (0, 0))],
        out_specs=pl.BlockSpec((row_block, vpad), lambda i: (i, 0)),
        compiler_params=_compiler_params(),
    )(ctx2d, table)


def _pallas_logits_and_loss(ctx2d, tgt2d, table, *, n_rows, row_block,
                            out_dtype):
    bn_pad = ctx2d.shape[0]
    vpad = table.shape[1]
    nblk = bn_pad // row_block
    kernel = functools.partial(_fused_kernel, n_rows=n_rows,
                               row_block=row_block,
                               mask_rows=(bn_pad != n_rows))
    return pl.pallas_call(
        kernel,
        out_shape=(jax.ShapeDtypeStruct((bn_pad, vpad), out_dtype),
                   jax.ShapeDtypeStruct((nblk * SUBLANE, LANE), jnp.float32)),
        grid=(nblk,),
        in_specs=[pl.BlockSpec((row_block, 1), lambda i: (i, 0)),
                  pl.BlockSpec((row_block, 1), lambda i: (i, 0)),
                  pl.BlockSpec((vpad, vpad), lambda i: (0, 0))],
        out_specs=(pl.BlockSpec((row_block, vpad), lambda i: (i, 0)),
                   pl.BlockSpec((SUBLANE, LANE), lambda i: (i, 0))),
        compiler_params=_compiler_params(),
    )(ctx2d, tgt2d, table)


def _pallas_loss(ctx2d, tgt2d, table, *, n_rows, row_block):
    bn_pad = ctx2d.shape[0]
    vpad = table.shape[1]
    nblk = bn_pad // row_block
    kernel = functools.partial(_loss_kernel, n_rows=n_rows,
                               row_block=row_block,
                               mask_rows=(bn_pad != n_rows))
    return pl.pallas_call(
        kernel,
        out_shape=jax.ShapeDtypeStruct((nblk * SUBLANE, LANE), jnp.float32),
        grid=(nblk,),
        in_specs=[pl.BlockSpec((row_block, 1), lambda i: (i, 0)),
                  pl.BlockSpec((row_block, 1), lambda i: (i, 0)),
                  pl.BlockSpec((vpad, vpad), lambda i: (0, 0))],
        out_specs=pl.BlockSpec((SUBLANE, LANE), lambda i: (i, 0)),
        compiler_params=_compiler_params(),
    )(ctx2d, tgt2d, table)


def _mean_from_partials(partials, n_rows):
    nblk = partials.shape[0] // SUBLANE
    return jnp.sum(partials.reshape(nblk, SUBLANE, LANE)[:, 0, 0]) / n_rows


# ----------------------------------------------------------------------------
# Model wrapper (mirrors BigramLanguageModel.forward semantics)
# ----------------------------------------------------------------------------
def init_params(key, vocab_size, emb_dim, context_length):
    k1, k2, k3, k4 = jax.random.split(key, 4)
    return {
        # nn.Embedding default init: N(0, 1)
        "embedding_table": jax.random.normal(k1, (vocab_size, emb_dim),
                                             jnp.float32),
        # unused in forward (kept for parity with __init__)
        "position_embedding_table": jax.random.normal(
            k2, (context_length, emb_dim), jnp.float32),
        # nn.Linear(emb_dim, vocab_size): U(-1/sqrt(D), 1/sqrt(D)); stored (D, V)
        "head_w": jax.random.uniform(k3, (emb_dim, vocab_size), jnp.float32,
                                     minval=-1.0 / jnp.sqrt(emb_dim),
                                     maxval=1.0 / jnp.sqrt(emb_dim)),
        "head_b": jax.random.uniform(k4, (1, vocab_size), jnp.float32,
                                     minval=-1.0 / jnp.sqrt(emb_dim),
                                     maxval=1.0 / jnp.sqrt(emb_dim)),
    }


def forward(params, contexts, targets=None, *, fused_table=None,
            logits_dtype=jnp.float32, return_logits=True,
            return_padded=False):
    """PyTorch-parity forward.

    Optional perf knobs (defaults preserve exact module semantics):
      fused_table   : precomputed make_fused_table(params) (hoist per weight update)
      logits_dtype  : jnp.bfloat16 halves the logits HBM writeback (precision!)
      return_logits : False -> targets branch returns (None, loss), skipping the
                      logits writeback entirely (order-of-magnitude cheaper)
      return_padded : True -> return the lane-dense (bn_pad, 128) logits as-is
                      (pad lanes hold -1e30), avoiding the wrapper compaction pass
    """
    B, N = contexts.shape
    V = params["embedding_table"].shape[0]
    BN = B * N
    row_block = min(MAX_ROW_BLOCK, _round_up(BN, SUBLANE))
    bn_pad = _round_up(BN, row_block)

    if fused_table is None:
        fused_table = make_fused_table(params)

    ctx2d = jnp.pad(contexts.reshape(BN).astype(jnp.int32),
                    (0, bn_pad - BN)).reshape(bn_pad, 1)

    if targets is None:
        logits = _pallas_logits(ctx2d, fused_table, row_block=row_block,
                                out_dtype=logits_dtype)
        if return_padded:
            return logits, None
        return logits[:BN, :V].reshape(B, N, V), None

    tgt2d = jnp.pad(targets.reshape(BN).astype(jnp.int32),
                    (0, bn_pad - BN)).reshape(bn_pad, 1)

    if not return_logits:
        partials = _pallas_loss(ctx2d, tgt2d, fused_table, n_rows=BN,
                                row_block=row_block)
        return None, _mean_from_partials(partials, BN)

    logits, partials = _pallas_logits_and_loss(
        ctx2d, tgt2d, fused_table, n_rows=BN, row_block=row_block,
        out_dtype=logits_dtype)
    loss = _mean_from_partials(partials, BN)
    if return_padded:
        return logits, loss
    # PyTorch returns the flattened (B*N, V) logits view in the targets branch.
    # This compaction is an extra HBM pass; set return_padded=True to skip it.
    return logits[:BN, :V], loss


# TODO(synk): generate() uses a torch.multinomial autoregressive sampling loop;
# host-side control flow, not a kernel hot path, omitted here.


if __name__ == "__main__":
    key = jax.random.PRNGKey(0)
    pkey, ckey, tkey, c2key, t2key = jax.random.split(key, 5)

    B, N = 2, context_length
    params = init_params(pkey, vocab_size, emb_dim, context_length)
    contexts = jax.random.randint(ckey, (B, N), 0, vocab_size, jnp.int32)
    targets = jax.random.randint(tkey, (B, N), 0, vocab_size, jnp.int32)

    def ref_forward(ctx, tgt):
        emb = params["embedding_table"][ctx.reshape(-1)]
        logits = jnp.dot(emb, params["head_w"],
                         precision=jax.lax.Precision.HIGHEST) + params["head_b"]
        lse = jax.nn.logsumexp(logits, axis=-1)
        corr = jnp.take_along_axis(logits, tgt.reshape(-1, 1), axis=-1)[:, 0]
        return logits, jnp.mean(lse - corr)

    # Path 1: no targets -> (B, N, V) logits, loss is None
    logits3d, loss_none = forward(params, contexts, targets=None)
    logits3d = jax.block_until_ready(logits3d)
    assert logits3d.shape == (B, N, vocab_size) and loss_none is None

    # Path 2: with targets -> flattened (B*N, V) logits + scalar mean CE loss
    logits_flat, loss = forward(params, contexts, targets)
    logits_flat, loss = jax.block_until_ready((logits_flat, loss))
    assert logits_flat.shape == (B * N, vocab_size) and loss.shape == ()

    ref_logits, ref_loss = ref_forward(contexts, targets)
    assert jnp.allclose(logits_flat, ref_logits, atol=1e-4), (
        float(jnp.max(jnp.abs(logits_flat - ref_logits))))
    assert jnp.allclose(logits3d.reshape(B * N, vocab_size), ref_logits,
                        atol=1e-4)
    assert jnp.allclose(loss, ref_loss, atol=1e-4), (loss, ref_loss)

    # Path 3: loss-only fast path (skips the logits HBM writeback entirely)
    no_logits, loss_only = forward(params, contexts, targets,
                                   return_logits=False)
    loss_only = jax.block_until_ready(loss_only)
    assert no_logits is None
    assert jnp.allclose(loss_only, ref_loss, atol=1e-4), (loss_only, ref_loss)

    # Path 4: ragged shape (exercises padded-row masking) + hoisted fused table
    B2, N2 = 3, 7
    ctx2 = jax.random.randint(c2key, (B2, N2), 0, vocab_size, jnp.int32)
    tgt2 = jax.random.randint(t2key, (B2, N2), 0, vocab_size, jnp.int32)
    table = make_fused_table(params)
    lf2, loss2 = forward(params, ctx2, tgt2, fused_table=table)
    lf2, loss2 = jax.block_until_ready((lf2, loss2))
    ref_l2, ref_loss2 = ref_forward(ctx2, tgt2)
    assert jnp.allclose(lf2, ref_l2, atol=1e-4)
    assert jnp.allclose(loss2, ref_loss2, atol=1e-4), (loss2, ref_loss2)

    # Path 5: optional bf16 logits writeback (shape/dtype smoke test)
    lbf16, _ = forward(params, contexts, logits_dtype=jnp.bfloat16)
    lbf16 = jax.block_until_ready(lbf16)
    assert lbf16.dtype == jnp.bfloat16 and lbf16.shape == (B, N, vocab_size)

    print("KERNEL_OK")
</pallas_src>

<mosaic_0001>
module attributes {stable_mosaic.version = 11 : i64} {
  func.func @_logits_kernel(%arg0: i32, %arg1: memref<16x1xi32, #tpu.memory_space<vmem>>, %arg2: memref<128x128xf32, #tpu.memory_space<vmem>>, %arg3: memref<16x128xf32, #tpu.memory_space<vmem>>) attributes {dimension_semantics = [#tpu.dimension_semantics<parallel>], iteration_bounds = array<i64: 1>, scalar_prefetch = 0 : i64, scratch_operands = 0 : i64, tpu.core_type = #tpu.core_type<tc>, window_params = [{transform_indices = @transform_0, window_bounds = array<i64: 16, 1>}, {pipeline_mode = #tpu.pipeline_mode<synchronous>, transform_indices = @transform_1, window_bounds = array<i64: 128, 128>}, {transform_indices = @transform_2, window_bounds = array<i64: 16, 128>}]} {
    %c0 = arith.constant 0 : index
    %c0_0 = arith.constant 0 : index
    %0 = vector.load %arg1[%c0, %c0_0] : memref<16x1xi32, #tpu.memory_space<vmem>>, vector<16x1xi32>
    %1 = tpu.iota {dimensions = array<i32: 1>} : vector<1x128xi32>
    %2 = vector.broadcast %0 : vector<16x1xi32> to vector<16x128xi32>
    %3 = vector.broadcast %1 : vector<1x128xi32> to vector<16x128xi32>
    %4 = arith.cmpi eq, %2, %3 : vector<16x128xi32>
    %5 = arith.extui %4 : vector<16x128xi1> to vector<16x128xi32>
    %6 = arith.sitofp %5 : vector<16x128xi32> to vector<16x128xf32>
    %c0_1 = arith.constant 0 : index
    %c0_2 = arith.constant 0 : index
    %7 = vector.load %arg2[%c0_1, %c0_2] : memref<128x128xf32, #tpu.memory_space<vmem>>, vector<128x128xf32>
    %cst = arith.constant dense<0.000000e+00> : vector<16x128xf32>
    %8 = tpu.matmul %6, %7, %cst {dimension_numbers = #tpu.dot_dimension_numbers<[1], [0], [0], [1], [0, 0, 1, 1], [], []>} : vector<16x128xf32>, vector<128x128xf32>, vector<16x128xf32> -> vector<16x128xf32>
    %c0_3 = arith.constant 0 : index
    %c0_4 = arith.constant 0 : index
    %9 = vector.load %arg3[%c0_3, %c0_4] : memref<16x128xf32, #tpu.memory_space<vmem>>, vector<16x128xf32>
    tpu.vector_store %arg3[%c0_3, %c0_4], %8 {strides = array<i32>} : memref<16x128xf32, #tpu.memory_space<vmem>>, vector<16x128xf32>,
    return
  }
  func.func @transform_0(%arg0: i32) -> (i32, i32) {
    %c0_i32 = arith.constant 0 : i32
    %c0_i32_0 = arith.constant 0 : i32
    return %arg0, %c0_i32 : i32, i32
  }
  func.func @transform_1(%arg0: i32) -> (i32, i32) {
    %c0_i32 = arith.constant 0 : i32
    %c0_i32_0 = arith.constant 0 : i32
    %c0_i32_1 = arith.constant 0 : i32
    return %c0_i32, %c0_i32_0 : i32, i32
  }
  func.func @transform_2(%arg0: i32) -> (i32, i32) {
    %c0_i32 = arith.constant 0 : i32
    %c0_i32_0 = arith.constant 0 : i32
    return %arg0, %c0_i32 : i32, i32
  }
}

</mosaic_0001>

<bundles_post_ra>
// kernel: tpu_custom_call.1
= control target key start
LH: loop header
LB: loop body
LE: loop exit
PB: predicated region body
PF: predicated region fallthrough
CT: control target
= control target key end

     0   :  { %7 = vsyncpa [#allocation3], 0  ;;  %s353_s0 = inlined_call_operand.vmem [shape: s32[16,1], index: 0, kind: input, shape index: {}]   ;;  %s354_s1 = inlined_call_operand.hbm [shape: f32[128,128], index: 1, kind: input, shape index: {}]   ;;  %s355_s2 = inlined_call_operand.hbm [shape: f32[16,128], index: 2, kind: output, shape index: {}]  }
   0x1   :  { %8 = vsyncpa [#allocation4], 0  ;;  %s296_s9 = smov [#allocation2]   ;;  %s248_s13 = scalar_lea.hbm %s354_s1, 2048 }
   0x2   :  { %s16_s10 = sshll.u32 %s296_s9, 4  ;;  %p249_p0 = scmp.ne.s32.totalorder %s354_s1, %s248_s13  ;;  %s17_s10 = int_to_ptr.vmem [resolvable:$true] %s16_s10 }
   0x3   :  { %p252_p1 = scmp.lt.u32.totalorder %s248_s13, %s354_s1 }
   0x5   :  { %p254_p2 = pnand %p252_p1, %p249_p0 }
   0x7   :  { %257 = shalt.err (!%p254_p2)
}
   0x8   :  { %s258_s18 = scalar_lea.vmem %s17_s10, 2048  ;;  %p263_p4 = scmp.lt.s32.totalorder %s17_s10, %s17_s10 }
   0x9   :  { %p259_p3 = scmp.ne.s32.totalorder %s17_s10, %s258_s18  ;;  %p264_p5 = scmp.lt.s32.totalorder %s258_s18, %s258_s18 }
   0xb   :  { %p265_p6 = por %p264_p5, %p263_p4 }
   0xd   :  { %p266_p7 = pnand %p265_p6, %p259_p3 }
   0xf   :  { %269 = shalt.err (!%p266_p7)
}
  0x10   :  { %s297_s19 = smov 128   ;;  %s298_s20 = smov 8  }
  0x11   :  { %22 = dma.hbm_to_vmem [thread:$0]  %s354_s1, 2048, %s17_s10, [#allocation3], %s297_s19, %s297_s19, %s298_s20  }
  0x12   :  { %292 = dma.done.wait [#allocation3], 2048  }
  0x13   :  { %293 = vsyncadd [#allocation3], 4294965248  ;;  %v299_v0 = vmov 0   ;;  %v26_v1 = vld [vmem:[%s353_s0] sm:$0xff]  ;;  %v43_v3 = vld [vmem:[#allocation2 + $0x8] sm:$0xff]  ;;  %v28_v27 = vlaneseq  ;;  %v300_v30 = vmov 1.0  }
  0x14   :  { %247 = vset.pattern.permute.xlu0 %v299_v0  ;;  %v42_v2 = vld [vmem:[#allocation2] sm:$0xff]  ;;  %v44_v4 = vld [vmem:[#allocation2 + $0x10] sm:$0xff]  ;;  %v45_v5 = vld [vmem:[#allocation2 + $0x18] sm:$0xff] }
  0x15   :  { %31 = vperm.xlu0 %247, %v26_v1   ;;  %v27_v6 = vld [vmem:[%s353_s0 + $0x8] sm:$0xff]  ;;  %v209_v7 = vpack.c.bf16 %v43_v3, %v42_v2  ;;  %v213_v8 = vpack.c.bf16 %v45_v5, %v44_v4  ;;  %v46_v9 = vld [vmem:[#allocation2 + $0x20] sm:$0xff]  ;;  %v48_v12 = vld [vmem:[#allocation2 + $0x30] sm:$0xff]  ;;  %v29_v28 = vand.u32 127, %v28_v27  ;;  %s301_s0 = smov [#allocation5]  }
  0x16   :  { %v47_v10 = vld [vmem:[#allocation2 + $0x28] sm:$0xff]  ;;  %v49_v13 = vld [vmem:[#allocation2 + $0x38] sm:$0xff]  ;;  %v50_v15 = vld [vmem:[#allocation2 + $0x40] sm:$0xff]  ;;  %s140_s1 = sshll.u32 %s301_s0, 4  ;;  %s141_s1 = int_to_ptr.vmem [resolvable:$true] %s140_s1 }
  0x17   :  { %210 = vmatprep.subr.bf16.mxu0 %v209_v7  ;;  %v217_v11 = vpack.c.bf16 %v47_v10, %v46_v9  ;;  %v221_v14 = vpack.c.bf16 %v49_v13, %v48_v12  ;;  %v51_v16 = vld [vmem:[#allocation2 + $0x48] sm:$0xff]  ;;  %v52_v18 = vld [vmem:[#allocation2 + $0x50] sm:$0xff]  ;;  %v53_v19 = vld [vmem:[#allocation2 + $0x58] sm:$0xff]  ;;  %s270_s27 = scalar_lea.vmem %s141_s1, 256  ;;  %p275_p9 = scmp.lt.s32.totalorder %s141_s1, %s141_s1 }
  0x18   :  { %212 = vmatpush3.bf16.msra.mxu0 %v209_v7  ;;  %v225_v17 = vpack.c.bf16 %v51_v16, %v50_v15  ;;  %v229_v20 = vpack.c.bf16 %v53_v19, %v52_v18  ;;  %v54_v21 = vld [vmem:[#allocation2 + $0x60] sm:$0xff]  ;;  %v55_v22 = vld [vmem:[#allocation2 + $0x68] sm:$0xff]  ;;  %v56_v24 = vld [vmem:[#allocation2 + $0x70] sm:$0xff]  ;;  %p271_p8 = scmp.ne.s32.totalorder %s141_s1, %s270_s27  ;;  %p276_p10 = scmp.lt.s32.totalorder %s270_s27, %s270_s27 }
  0x19   :  { %34 = vperm.xlu0 %247, %v27_v6   ;;  %214 = vmatprep.subr.bf16.mxu0 %v213_v8  ;;  %v233_v23 = vpack.c.bf16 %v55_v22, %v54_v21  ;;  %v57_v25 = vld [vmem:[#allocation2 + $0x78] sm:$0xff] }
  0x1a   :  { %v237_v26 = vpack.c.bf16 %v57_v25, %v56_v24  ;;  %p277_p11 = por %p276_p10, %p275_p9 }
  0x1c   :  { %216 = vmatpush3.bf16.msra.mxu0 %v213_v8  ;;  %p278_p12 = pnand %p277_p11, %p271_p8 }
  0x1d   :  { %218 = vmatprep.subr.bf16.mxu0 %v217_v11 }
  0x20   :  { %220 = vmatpush3.bf16.msra.mxu0 %v217_v11 }
  0x21   :  { %222 = vmatprep.subr.bf16.mxu0 %v221_v14 }
  0x24   :  { %224 = vmatpush3.bf16.msra.mxu0 %v221_v14 }
  0x25   :  { %226 = vmatprep.subr.bf16.mxu0 %v225_v17 }
  0x28   :  { %228 = vmatpush3.bf16.msra.mxu0 %v225_v17 }
  0x29   :  { %230 = vmatprep.subr.bf16.mxu0 %v229_v20 }
  0x2c   :  { %232 = vmatpush3.bf16.msra.mxu0 %v229_v20 }
  0x2d   :  { %234 = vmatprep.subr.bf16.mxu0 %v233_v23 }
  0x30   :  { %236 = vmatpush3.bf16.msra.mxu0 %v233_v23 }
  0x31   :  { %238 = vmatprep.subr.bf16.mxu0 %v237_v26 }
  0x34   :  { %240 = vmatpush3.bf16.msra.mxu0 %v237_v26 }
  0x94   :  { %v32_v29 = vpop.permute.xlu0 %31 }
  0x95   :  { %vm36_vm0 = vcmp.eq.s32.totalorder %v32_v29, %v29_v28 }
  0x96   :  { %206 = vmatprep.mubr.msk.f32.mxu0 %vm36_vm0, %v300_v30 }
  0x98   :  { %v35_v31 = vpop.permute.xlu0 %34 }
  0x99   :  { %vm37_vm1 = vcmp.eq.s32.totalorder %v35_v31, %v29_v28 }
  0x9a   :  { %207 = vmatmul.mubr.msk.f32.vlgmr.msra.gmra.mrb[0].mxu0 %vm37_vm1, %v300_v30 }
 0x16d   :  { %v208_v32 = vpop.f32.mrb[0].mxu0 }
 0x16e   :  { %134 = vst [vmem:[#allocation5 + $0x8] sm:$0xff] %v208_v32  ;;  %v124_v33 = vpop.f32.mrb[1].mxu0 }
 0x16f   :  { %133 = vst [vmem:[#allocation5] sm:$0xff] %v124_v33 }
 0x170   :  { %281 = shalt.err (!%p278_p12)
}
 0x171   :  { %s282_s30 = scalar_lea.hbm %s355_s2, 256 }
 0x172   :  { %p283_p13 = scmp.ne.s32.totalorder %s355_s2, %s282_s30  ;;  %p286_p0 = scmp.lt.u32.totalorder %s282_s30, %s355_s2 }
 0x174   :  { %p288_p1 = pnand %p286_p0, %p283_p13 }
 0x176   :  { %291 = shalt.err (!%p288_p1)
}
 0x177   :  { %146 = dma.vmem_to_hbm [thread:$0]  %s141_s1, 256, %s355_s2, [#allocation4], %s297_s19, %s297_s19, %s298_s20  }
 0x178   :  { %294 = dma.done.wait [#allocation4], 256  }
 0x179   :  { %295 = vsyncadd [#allocation4], 4294967040 }
 0x17a   :  { %150 = vsyncpa [#allocation3], 1 }
 0x17b   :  { %151 = vsyncpa [#allocation4], 1 }

</bundles_post_ra>
